<compile_context>
chip_gen: v6e
topology: v6e:2x2x1
jax: 0.10.0
libtpu: 0.0.40
codegen_flags: <defaults>
</compile_context>

<pallas_src>
import functools

import jax
import jax.numpy as jnp
from jax.experimental import pallas as pl
from jax.experimental.pallas import tpu as pltpu


def _round_up(x, m):
    return ((x + m - 1) // m) * m


def _sublane_pack(dtype):
    # Rows per (sublane, 128-lane) VMEM tile: 8 for f32, 16 for bf16, 32 for int8/fp8.
    return 32 // jnp.dtype(dtype).itemsize


# ---------------------------------------------------------------------------
# Kernel
# ---------------------------------------------------------------------------
def _mlp_kernel(x_ref, p1_ref, p2_ref, o_ref, *, in_dim, in_pad, hid_pad):
    # p1 = [ W1^T (in_dim, hid_pad) ; zero rows ; b1 at row in_pad ]
    # p2 = [ W2^T (hid_pad, out_dim)            ; b2 at row hid_pad ]
    x = x_ref[...]
    w1 = p1_ref[0:in_dim, :]                      # static, tile-start-aligned slices
    b1 = p1_ref[in_pad:in_pad + 1, :]             # bias row at a sublane-aligned offset
    w2 = p2_ref[0:hid_pad, :]
    b2 = p2_ref[hid_pad:hid_pad + 1, :]

    # hidden = relu(x @ W1 + b1): bf16 (or f32) MXU matmul, f32 accumulation,
    # f32 epilogue (v5e-safe: no bf16 VPU math needed).
    h = jnp.dot(x, w1, preferred_element_type=jnp.float32)
    h = jnp.maximum(h + b1.astype(jnp.float32), 0.0)

    # out = hidden @ W2 + b2: feed the MXU in the weight dtype, keep f32 acc.
    o = jnp.dot(h.astype(w2.dtype), w2, preferred_element_type=jnp.float32)
    o = o + b2.astype(jnp.float32)
    o_ref[...] = o.astype(o_ref.dtype)            # trimmed (tile_b, out_dim) store


# ---------------------------------------------------------------------------
# One-time parameter packing (do at init, not per call)
# ---------------------------------------------------------------------------
def pack_params(w1, b1, w2, b2, dtype=jnp.bfloat16):
    """Transpose to [in, out], zero-pad hidden to a sublane-pack multiple, and
    append each bias as an extra row at a sublane-aligned offset."""
    hidden_dim, input_dim = w1.shape
    output_dim = w2.shape[0]
    sub = _sublane_pack(dtype)
    in_pad = _round_up(input_dim, sub)
    hid_pad = _round_up(hidden_dim, sub)

    p1 = jnp.zeros((in_pad + 1, hid_pad), dtype)
    p1 = p1.at[:input_dim, :hidden_dim].set(w1.T.astype(dtype))
    p1 = p1.at[in_pad, :hidden_dim].set(b1.astype(dtype))

    # Padded hidden rows of p2 are zero -> padded hidden activations (0 after
    # ReLU since their bias is 0) contribute exactly 0 to the output.
    p2 = jnp.zeros((hid_pad + 1, output_dim), dtype)
    p2 = p2.at[:hidden_dim, :].set(w2.T.astype(dtype))
    p2 = p2.at[hid_pad, :].set(b2.astype(dtype))
    return p1, p2


# ---------------------------------------------------------------------------
# Wrapper
# ---------------------------------------------------------------------------
_TILE_B_CAP = 8192  # f32 x+out tiles (lane-padded in VMEM), double-buffered ~ 16 MiB.


def _pick_tile_b(batch):
    tb_full = _round_up(batch, 8)
    if tb_full <= 2048:
        # Small batch: one step; splitting would only add ~0.35 us/step overhead.
        return tb_full
    # Large batch: cap the tile and force >= 2 steps so the "parallel" axis
    # shards across both v7x TensorCores (harmless on single-TC v5e/v6e).
    n_steps = max(2, pl.cdiv(batch, _TILE_B_CAP))
    return _round_up(pl.cdiv(batch, n_steps), 8)


def sales_predictor_forward(x, p1, p2, *, tile_b=None, out_dtype=jnp.float32):
    """Fused forward: relu(x @ W1 + b1) @ W2 + b2, using packed params p1/p2."""
    batch, input_dim = x.shape
    in_pad = p1.shape[0] - 1
    hid_pad = p1.shape[1]
    output_dim = p2.shape[1]
    assert p2.shape[0] == hid_pad + 1
    assert in_pad >= input_dim

    if tile_b is None:
        tile_b = _pick_tile_b(batch)
    grid = (pl.cdiv(batch, tile_b),)

    cost = pl.CostEstimate(
        flops=2 * batch * (input_dim * hid_pad + hid_pad * output_dim),
        transcendentals=0,
        bytes_accessed=(x.size * x.dtype.itemsize
                        + p1.size * p1.dtype.itemsize
                        + p2.size * p2.dtype.itemsize
                        + batch * output_dim * jnp.dtype(out_dtype).itemsize),
    )

    kernel = functools.partial(_mlp_kernel, in_dim=input_dim, in_pad=in_pad,
                               hid_pad=hid_pad)

    return pl.pallas_call(
        kernel,
        out_shape=jax.ShapeDtypeStruct((batch, output_dim), out_dtype),
        grid=grid,
        in_specs=[
            pl.BlockSpec((tile_b, input_dim), lambda i: (i, 0)),        # tiled over batch
            pl.BlockSpec((in_pad + 1, hid_pad), lambda i: (0, 0)),      # VMEM-resident
            pl.BlockSpec((hid_pad + 1, output_dim), lambda i: (0, 0)),  # VMEM-resident
        ],
        out_specs=pl.BlockSpec((tile_b, output_dim), lambda i: (i, 0)),
        compiler_params=pltpu.CompilerParams(dimension_semantics=("parallel",)),
        cost_estimate=cost,
    )(x, p1, p2)


# ---------------------------------------------------------------------------
# References
# ---------------------------------------------------------------------------
def _reference_forward_f32(x, w1, b1, w2, b2):
    h = jnp.maximum(x @ w1.T + b1, 0.0)
    return h @ w2.T + b2


def _reference_forward_cast(x, w1, b1, w2, b2, dtype):
    """Mirrors the kernel numerics: cast streams to `dtype`, accumulate in f32."""
    f32 = jnp.float32
    xd = x.astype(dtype).astype(f32)
    w1d, b1d = w1.astype(dtype).astype(f32), b1.astype(dtype).astype(f32)
    w2d, b2d = w2.astype(dtype).astype(f32), b2.astype(dtype).astype(f32)
    h = jnp.maximum(xd @ w1d.T + b1d, 0.0)
    h = h.astype(dtype).astype(f32)
    return h @ w2d.T + b2d


if __name__ == "__main__":
    # Small shapes consistent with the module: input_dim=16, hidden_dim=32, output_dim=4.
    batch, input_dim, hidden_dim, output_dim = 8, 16, 32, 4
    param_dtype = jnp.bfloat16   # bf16 x/weight streams, f32 accumulation (safe on v5e/v6e/v7x)

    key = jax.random.PRNGKey(0)
    kx, kw1, kb1, kw2, kb2 = jax.random.split(key, 5)

    x = jax.random.normal(kx, (batch, input_dim), dtype=jnp.float32)
    # Deterministic parameter init (roughly matching nn.Linear's uniform scale).
    w1 = jax.random.uniform(kw1, (hidden_dim, input_dim), jnp.float32,
                            minval=-1.0, maxval=1.0) / jnp.sqrt(input_dim)
    b1 = jax.random.uniform(kb1, (hidden_dim,), jnp.float32,
                            minval=-1.0, maxval=1.0) / jnp.sqrt(input_dim)
    w2 = jax.random.uniform(kw2, (output_dim, hidden_dim), jnp.float32,
                            minval=-1.0, maxval=1.0) / jnp.sqrt(hidden_dim)
    b2 = jax.random.uniform(kb2, (output_dim,), jnp.float32,
                            minval=-1.0, maxval=1.0) / jnp.sqrt(hidden_dim)

    # One-time packing (transpose + pad + bias fold) outside the per-call path.
    p1, p2 = pack_params(w1, b1, w2, b2, dtype=param_dtype)
    x_in = x.astype(param_dtype)   # bf16 x stream (halves the dominant HBM read)

    out = sales_predictor_forward(x_in, p1, p2)
    out = jax.block_until_ready(out)
    assert out.shape == (batch, output_dim)

    # Tight check against a reference with identical cast points (f32 accumulation).
    ref_cast = _reference_forward_cast(x, w1, b1, w2, b2, param_dtype)
    assert jnp.allclose(out, ref_cast, atol=1e-4, rtol=1e-4), \
        float(jnp.max(jnp.abs(out - ref_cast)))

    # Loose sanity check against the pure-f32 module semantics.
    ref_f32 = _reference_forward_f32(x, w1, b1, w2, b2)
    assert jnp.allclose(out, ref_f32, atol=1e-1, rtol=1e-1), \
        float(jnp.max(jnp.abs(out - ref_f32)))

    print("KERNEL_OK")
</pallas_src>

<mosaic_0001>
module attributes {stable_mosaic.version = 11 : i64} {
  func.func @_mlp_kernel(%arg0: i32, %arg1: memref<8x16xbf16, #tpu.memory_space<vmem>>, %arg2: memref<17x32xbf16, #tpu.memory_space<vmem>>, %arg3: memref<33x4xbf16, #tpu.memory_space<vmem>>, %arg4: memref<8x4xf32, #tpu.memory_space<vmem>>) attributes {dimension_semantics = [#tpu.dimension_semantics<parallel>], iteration_bounds = array<i64: 1>, scalar_prefetch = 0 : i64, scratch_operands = 0 : i64, tpu.core_type = #tpu.core_type<tc>, window_params = [{transform_indices = @transform_0, window_bounds = array<i64: 8, 16>}, {pipeline_mode = #tpu.pipeline_mode<synchronous>, transform_indices = @transform_1, window_bounds = array<i64: 17, 32>}, {pipeline_mode = #tpu.pipeline_mode<synchronous>, transform_indices = @transform_2, window_bounds = array<i64: 33, 4>}, {transform_indices = @transform_3, window_bounds = array<i64: 8, 4>}]} {
    %c0 = arith.constant 0 : index
    %c0_0 = arith.constant 0 : index
    %0 = vector.load %arg1[%c0, %c0_0] : memref<8x16xbf16, #tpu.memory_space<vmem>>, vector<8x16xbf16>
    %c0_1 = arith.constant 0 : index
    %c0_2 = arith.constant 0 : index
    %1 = vector.load %arg2[%c0_1, %c0_2] : memref<17x32xbf16, #tpu.memory_space<vmem>>, vector<16x32xbf16>
    %c16 = arith.constant 16 : index
    %c0_3 = arith.constant 0 : index
    %2 = vector.load %arg2[%c16, %c0_3] : memref<17x32xbf16, #tpu.memory_space<vmem>>, vector<1x32xbf16>
    %c0_4 = arith.constant 0 : index
    %c0_5 = arith.constant 0 : index
    %3 = vector.load %arg3[%c0_4, %c0_5] : memref<33x4xbf16, #tpu.memory_space<vmem>>, vector<32x4xbf16>
    %c32 = arith.constant 32 : index
    %c0_6 = arith.constant 0 : index
    %4 = vector.load %arg3[%c32, %c0_6] : memref<33x4xbf16, #tpu.memory_space<vmem>>, vector<1x4xbf16>
    %cst = arith.constant dense<0.000000e+00> : vector<8x32xf32>
    %5 = tpu.matmul %0, %1, %cst {dimension_numbers = #tpu.dot_dimension_numbers<[1], [0], [0], [1], [0, 0, 1, 1], [], []>} : vector<8x16xbf16>, vector<16x32xbf16>, vector<8x32xf32> -> vector<8x32xf32>
    %6 = arith.extf %2 : vector<1x32xbf16> to vector<1x32xf32>
    %7 = vector.broadcast %6 : vector<1x32xf32> to vector<8x32xf32>
    %8 = arith.addf %5, %7 : vector<8x32xf32>
    %cst_7 = arith.constant 0.000000e+00 : f32
    %9 = vector.broadcast %cst_7 : f32 to vector<8x32xf32>
    %10 = arith.maximumf %8, %9 : vector<8x32xf32>
    %11 = arith.truncf %10 : vector<8x32xf32> to vector<8x32xbf16>
    %cst_8 = arith.constant dense<0.000000e+00> : vector<8x4xf32>
    %12 = tpu.matmul %11, %3, %cst_8 {dimension_numbers = #tpu.dot_dimension_numbers<[1], [0], [0], [1], [0, 0, 1, 1], [], []>} : vector<8x32xbf16>, vector<32x4xbf16>, vector<8x4xf32> -> vector<8x4xf32>
    %13 = arith.extf %4 : vector<1x4xbf16> to vector<1x4xf32>
    %14 = vector.broadcast %13 : vector<1x4xf32> to vector<8x4xf32>
    %15 = arith.addf %12, %14 : vector<8x4xf32>
    %c0_9 = arith.constant 0 : index
    %c0_10 = arith.constant 0 : index
    %16 = vector.load %arg4[%c0_9, %c0_10] : memref<8x4xf32, #tpu.memory_space<vmem>>, vector<8x4xf32>
    tpu.vector_store %arg4[%c0_9, %c0_10], %15 {strides = array<i32>} : memref<8x4xf32, #tpu.memory_space<vmem>>, vector<8x4xf32>,
    return
  }
  func.func @transform_0(%arg0: i32) -> (i32, i32) {
    %c0_i32 = arith.constant 0 : i32
    %c0_i32_0 = arith.constant 0 : i32
    return %arg0, %c0_i32 : i32, i32
  }
  func.func @transform_1(%arg0: i32) -> (i32, i32) {
    %c0_i32 = arith.constant 0 : i32
    %c0_i32_0 = arith.constant 0 : i32
    %c0_i32_1 = arith.constant 0 : i32
    return %c0_i32, %c0_i32_0 : i32, i32
  }
  func.func @transform_2(%arg0: i32) -> (i32, i32) {
    %c0_i32 = arith.constant 0 : i32
    %c0_i32_0 = arith.constant 0 : i32
    %c0_i32_1 = arith.constant 0 : i32
    return %c0_i32, %c0_i32_0 : i32, i32
  }
  func.func @transform_3(%arg0: i32) -> (i32, i32) {
    %c0_i32 = arith.constant 0 : i32
    %c0_i32_0 = arith.constant 0 : i32
    return %arg0, %c0_i32 : i32, i32
  }
}

</mosaic_0001>

<bundles_post_ra>
// kernel: tpu_custom_call.1
= control target key start
LH: loop header
LB: loop body
LE: loop exit
PB: predicated region body
PF: predicated region fallthrough
CT: control target
= control target key end

     0   :  { %v177_v0 = vmov 0.0   ;;  %vm178_vm0 = vmmov 0   ;;  %vm35_vm1 = vcmask 130048   ;;  %v25_v5 = vlaneseq  ;;  %s220_s1 = inlined_call_operand.vmem [shape: bf16[17,32], index: 1, kind: input, shape index: {}]   ;;  %s221_s0 = inlined_call_operand.vmem [shape: bf16[8,16], index: 0, kind: input, shape index: {}]   ;;  %s222_s2 = inlined_call_operand.vmem [shape: bf16[33,4], index: 2, kind: input, shape index: {}]   ;;  %s223_s3 = inlined_call_operand.vmem [shape: f32[8,4], index: 3, kind: output, shape index: {}]  }
   0x1   :  { %158 = vmatprep.subr.bf16.mxu0 %v177_v0  ;;  %v174_v1 = vld [vmem:[%s220_s1] sm:$0xff]   ;;  %160 = vmatprep.mubr.msk.bf16.mxu0 %vm178_vm0, %v177_v0  ;;  %v175_v3 = vld [vmem:[%s222_s2 + $0x8] sm:$0xff]   ;;  %vm98_vm2 = vcmask 261120   ;;  %v23_v18 = vld [vmem:[%s222_s2 + $0x10] sm:$0x1]  ;;  %vm142_vm3 = vcmask 31744  }
   0x2   :  { %164 = vmatprep.subr.bf16.mxu1 %v177_v0  ;;  %168 = vmatprep.mubr.msk.bf16.mxu1 %vm178_vm0, %v177_v0  ;;  %v15_v2 = vld [vmem:[%s221_s0] sm:$0xf]  ;;  %v26_v6 = vshrl.u32 %v25_v5, 7  ;;  %v18_v7 = vld [vmem:[%s220_s1 + $0x8] sm:$0x1]  ;;  %v81_v19 = vunpack.c.l.bf16 %v23_v18 }
   0x3   :  { %159 = vmatpush3.bf16.msra.mxu0 %v174_v1  ;;  %165 = vmatpush3.bf16.msra.mxu1 %v175_v3  ;;  %v176_v4 = vld [vmem:[%s222_s2] sm:$0xff]   ;;  %v24_v8 = vunpack.c.l.bf16 %v18_v7 }
   0x4   :  { %166 = vmatprep.subr.bf16.mxu1 %v177_v0  ;;  %v27_v9 = vsub.s32 0, %v26_v6 }
   0x6   :  { %161 = vmatmul.mubr.msk.bf16.vlgmr.msra.gmra.mxu0 %vm35_vm1, %v15_v2  ;;  %v28_v10 = vrot.slane %v24_v8, %v27_v9  ;;  %v85_v20 = vrot.slane %v81_v19, %v27_v9 }
   0x7   :  { %167 = vmatpush3.bf16.msra.mxu1 %v176_v4 }
  0xc6   :  { %v73_v11 = vpop.f32.mrf.mxu0 }
  0xc7   :  { %v74_v12 = vadd.f32 %v73_v11, %v28_v10 }
  0xc8   :  { %v162_v13 = vpop.f32.mrf.mxu0 }
  0xc9   :  { %v79_v14 = vmax.f32 %v74_v12, 0.0 }
  0xca   :  { %v76_v15 = vpop.f32.mrf.mxu0 }
  0xcb   :  { %v80_v16 = vpack.c.bf16 %v79_v14, %v79_v14 }
  0xcc   :  { %v163_v17 = vpop.f32.mrf.mxu0 }
  0xcd   :  { %169 = vmatmul.mubr.msk.bf16.vlgmr.msra.gmra.mxu1 %vm98_vm2, %v80_v16 }
 0x18d   :  { %v136_v21 = vpop.f32.mrf.mxu1 }
 0x18e   :  { %v137_v22 = vadd.f32 %v136_v21, %v85_v20 }
 0x18f   :  { %v170_v23 = vpop.f32.mrf.mxu1 }
 0x190   :  { %143 = vst.msk [vmem:[%s223_s3] sm:$0xff] %vm142_vm3, %v137_v22 }
 0x191   :  { %v139_v24 = vpop.f32.mrf.mxu1 }
 0x193   :  { %v171_v25 = vpop.f32.mrf.mxu1 }

</bundles_post_ra>
